<compile_context>
chip_gen: v7x
topology: tpu7x:2x2x1
jax: 0.10.0
libtpu: 0.0.40
codegen_flags: <defaults>
</compile_context>

<pallas_src>
import functools

import jax
import jax.numpy as jnp
from jax.experimental import pallas as pl
from jax.experimental.pallas import tpu as pltpu

LANE = 128


def _round_up(n, m):
    return ((n + m - 1) // m) * m


def _pad2d(a, rows, cols):
    return jnp.pad(a, ((0, rows - a.shape[0]), (0, cols - a.shape[1])))


# ----------------------------------------------------------------------------
# Pallas kernel: the whole MLP chain fused on one activation row-tile
# ----------------------------------------------------------------------------
def fused_mlp_kernel(*refs, n_layers, use_layernorm, activation, eps, h_true,
                     compute_dtype):
    # refs = (x_ref, w_0..w_{n-1}, vec_ref, o_ref)
    x_ref = refs[0]
    w_refs = refs[1:1 + n_layers]
    vec_ref = refs[1 + n_layers]          # packed (bias[, gamma, beta]) rows, f32
    o_ref = refs[2 + n_layers]

    per_vec = 3 if use_layernorm else 1
    h_pad = w_refs[0].shape[1]
    tm = x_ref.shape[0]

    # cast to the matmul dtype in-kernel (no wrapper-side HBM cast pass)
    h = x_ref[...].astype(compute_dtype)

    # LayerNorm lane mask over the TRUE hidden width, hoisted out of the layer
    # loop (JAX does not CSE iota/broadcast, so build it exactly once).
    if use_layernorm and h_pad != h_true:
        lane = jax.lax.broadcasted_iota(jnp.int32, (tm, h_pad), 1)
        ln_mask = lane < h_true
    else:
        ln_mask = None
    inv_h = jnp.float32(1.0 / h_true)

    for layer in range(n_layers):
        # MXU matmul in compute dtype (bf16 by default), f32 accumulation.
        z = jnp.dot(h, w_refs[layer][...], preferred_element_type=jnp.float32)
        r0 = layer * per_vec
        z = z + vec_ref[r0:r0 + 1, :]                       # bias (f32)

        if use_layernorm:
            g = vec_ref[r0 + 1:r0 + 2, :]
            b2 = vec_ref[r0 + 2:r0 + 3, :]
            # one masked pass: E[z] and E[z^2] together, var = E[z^2] - mean^2
            zm = z if ln_mask is None else jnp.where(ln_mask, z, 0.0)
            mean = jnp.sum(zm, axis=-1, keepdims=True) * inv_h
            ex2 = jnp.sum(zm * zm, axis=-1, keepdims=True) * inv_h
            var = jnp.maximum(ex2 - mean * mean, 0.0)
            z = (z - mean) * jax.lax.rsqrt(var + eps)
            # padded gamma/beta lanes are 0, so padded lanes stay exactly 0
            z = z * g + b2

        if activation == "relu":
            z = jnp.maximum(z, 0.0)
        elif activation == "tanh":
            z = jnp.tanh(z)
        elif activation == "sigmoid":
            # NOTE: without LayerNorm, padded lanes become 0.5 here.  This is
            # harmless because the next layer's padded weight ROWS are zero and
            # the final store below only writes the true output width.
            z = jax.nn.sigmoid(z)
        elif activation in ("identity", None):
            pass
        else:
            raise NotImplementedError(f"activation {activation!r}")

        h = z.astype(compute_dtype) if layer + 1 < n_layers else z

    out_w = o_ref.shape[-1]
    if h.shape[-1] != out_w:
        h = h[:, :out_w]                 # drop padded lanes; store at true width
    o_ref[...] = h.astype(o_ref.dtype)


# ----------------------------------------------------------------------------
# Wrapper
# ----------------------------------------------------------------------------
def base_mlp_forward(x, params, *, tm=1024, compute_dtype=jnp.bfloat16):
    """BaseMLP.MLP(x) forward, fully fused into a single pallas_call."""
    if not params:                       # num_linear_layers == 0 -> Identity()
        return x

    compute_dtype = jnp.dtype(compute_dtype)
    N, Din = x.shape
    n_layers = len(params)
    use_layernorm = bool(params[0]["use_layernorm"])
    activation = params[0].get("activation", "relu")
    H = params[0]["w"].shape[1]
    eps = 1e-5
    H_pad = _round_up(H, LANE)           # lane-dense intermediate width

    # ---- parameters: weights in compute dtype, packed vectors in f32 ----------
    w_list = []
    d_in = Din                           # layer-0 contraction uses the true width
    for p in params:
        w_list.append(_pad2d(p["w"].astype(compute_dtype), d_in, H_pad))
        d_in = H_pad                     # padded rows are zero -> no corruption
    vec_rows = []
    for p in params:
        vec_rows.append(p["b"].reshape(1, -1))
        if use_layernorm:
            vec_rows.append(p["gamma"].reshape(1, -1))
            vec_rows.append(p["beta"].reshape(1, -1))
    vecs = jnp.concatenate(
        [_pad2d(v.astype(jnp.float32), 1, H_pad) for v in vec_rows], axis=0)

    # ---- row tile --------------------------------------------------------------
    row_align = 16 if compute_dtype == jnp.bfloat16 else 8
    tm_eff = max(row_align, min(tm, _round_up(N, row_align)))
    # v7x megacore: keep >= 2 grid steps on the "parallel" axis when the batch
    # is big enough to be worth splitting (grid=(1,) idles one TensorCore).
    if N >= 256 and _round_up(N, tm_eff) // tm_eff < 2:
        tm_eff = _round_up(pl.cdiv(N, 2), row_align)

    # ---- generation-aware VMEM budget ------------------------------------------
    try:
        vmem_cap = int(pltpu.get_tpu_info().vmem_capacity_bytes * 0.9)
    except Exception:
        vmem_cap = 58 * 1024 * 1024      # conservative (v7x: 64 MiB physical)

    param_bytes = sum(int(w.size) * w.dtype.itemsize for w in w_list)
    param_bytes += int(vecs.size) * vecs.dtype.itemsize
    out_itemsize = jnp.dtype(x.dtype).itemsize

    def vmem_estimate(rows):
        est = param_bytes                               # single-copy residents
        est += 2 * rows * Din * x.dtype.itemsize        # x tile (double-buffered)
        est += 2 * rows * H * out_itemsize              # out tile (double-buffered)
        est += 8 * rows * max(H_pad, Din) * 4           # in-kernel f32 temporaries
        return est

    while vmem_estimate(tm_eff) > vmem_cap and tm_eff > row_align:
        tm_eff = max(row_align, _round_up(tm_eff // 2, row_align))
    # TODO(synk): if even the minimum tile exceeds the cap (huge hidden dims),
    # a K-tiled / per-layer pipelined variant would be needed.

    vmem_limit = int(min(vmem_cap,
                         max(vmem_estimate(tm_eff) * 1.5 + param_bytes,
                             32 * 1024 * 1024)))

    # ---- batch: pad rows ONLY when ragged w.r.t. the tile ----------------------
    N_pad = _round_up(N, tm_eff)
    x_in = x if N_pad == N else jnp.pad(x, ((0, N_pad - N), (0, 0)))
    grid = (N_pad // tm_eff,)

    kernel = functools.partial(
        fused_mlp_kernel,
        n_layers=n_layers, use_layernorm=use_layernorm, activation=activation,
        eps=eps, h_true=H, compute_dtype=compute_dtype)

    def _param_specs(resident):
        if resident:
            # whole-array VMEM residency: copied once, single-buffered
            return [pl.BlockSpec(memory_space=pltpu.MemorySpace.VMEM)
                    for _ in range(n_layers + 1)]
        # fallback: full-array blocks with a constant index_map (pipelined)
        specs = [pl.BlockSpec(tuple(w.shape), lambda i: (0, 0)) for w in w_list]
        specs.append(pl.BlockSpec(tuple(vecs.shape), lambda i: (0, 0)))
        return specs

    def _run(resident):
        in_specs = ([pl.BlockSpec((tm_eff, Din), lambda i: (i, 0))]
                    + _param_specs(resident))
        return pl.pallas_call(
            kernel,
            out_shape=jax.ShapeDtypeStruct((N_pad, H), x.dtype),
            grid_spec=pltpu.PrefetchScalarGridSpec(
                num_scalar_prefetch=0,
                grid=grid,
                in_specs=in_specs,
                out_specs=pl.BlockSpec((tm_eff, H), lambda i: (i, 0)),
            ),
            compiler_params=pltpu.CompilerParams(
                dimension_semantics=("parallel",),
                vmem_limit_bytes=vmem_limit,
            ),
        )(x_in, *w_list, vecs)

    try:
        out = _run(resident=True)
    except Exception:
        # TODO(synk): whole-array VMEM placement unavailable -> double-buffered
        # constant-index params (correct, slightly more VMEM).
        out = _run(resident=False)

    # self.last_layer(x) is abstract in BaseMLP (raises NotImplementedError);
    # identity here.
    return out if N_pad == N else out[:N]


# ----------------------------------------------------------------------------
# Parameter construction matching BaseMLP._MLP layer shapes
# ----------------------------------------------------------------------------
def init_base_mlp_params(key, model_config):
    decoder_input = model_config.get(
        "decoder_input", model_config.get("hidden_channels", 64))
    hidden = model_config.get("hidden_dimensions", 64)
    num_linear_layers = model_config.get("num_linear_layers", 2)
    use_ln = model_config.get("batch_norm", False)
    activation = model_config.get("activation", "relu")

    if num_linear_layers == 0:
        return []

    # lin_in block + (num_linear_layers - 2) extra (lin, norm, act) blocks.
    n_blocks = 1 + max(0, num_linear_layers - 2)
    params = []
    d_in = decoder_input
    for _ in range(n_blocks):
        key, kw, kb = jax.random.split(key, 3)
        bound = float(d_in) ** -0.5            # torch Linear default init range
        w = jax.random.uniform(kw, (d_in, hidden), jnp.float32, -bound, bound)
        b = jax.random.uniform(kb, (1, hidden), jnp.float32, -bound, bound)
        gamma = jnp.ones((1, hidden), jnp.float32)   # LayerNorm weight
        beta = jnp.zeros((1, hidden), jnp.float32)   # LayerNorm bias
        params.append(dict(w=w, b=b, gamma=gamma, beta=beta,
                           use_layernorm=use_ln, activation=activation))
        d_in = hidden
    return params


# Pure-JAX reference for correctness checks.
def base_mlp_reference(x, params):
    h = x.astype(jnp.float32)
    for p in params:
        h = h @ p["w"] + p["b"]
        if p["use_layernorm"]:
            mean = jnp.mean(h, axis=-1, keepdims=True)
            var = jnp.mean((h - mean) ** 2, axis=-1, keepdims=True)
            h = (h - mean) * jax.lax.rsqrt(var + 1e-5)
            h = h * p["gamma"] + p["beta"]
        act = p.get("activation", "relu")
        if act == "relu":
            h = jnp.maximum(h, 0.0)
        elif act == "tanh":
            h = jnp.tanh(h)
        elif act == "sigmoid":
            h = jax.nn.sigmoid(h)
    return h


if __name__ == "__main__":
    model_config = {
        "decoder_input": 32,
        "hidden_dimensions": 32,
        "batch_norm": True,        # -> LayerNorm blocks
        "num_linear_layers": 3,    # -> lin_in + 1 extra (lin, norm, act) block
        "dropout_p": 0.0,          # stored by BaseMLP but never used in forward
    }

    key = jax.random.PRNGKey(0)
    key, kx = jax.random.split(key)
    x = jax.random.normal(kx, (16, 32), jnp.float32)   # (batch, decoder_input)

    params = init_base_mlp_params(key, model_config)
    ref = base_mlp_reference(x, params)

    # f32 compute path: tight check against the pure-JAX reference
    out_f32 = jax.block_until_ready(
        base_mlp_forward(x, params, compute_dtype=jnp.float32))
    assert out_f32.shape == ref.shape == (16, 32)
    assert jnp.allclose(out_f32, ref, atol=1e-4, rtol=1e-4), "f32 mismatch vs reference"

    # default path: bf16 matmuls on the MXU, f32 bias/LayerNorm/store
    out_bf16 = jax.block_until_ready(base_mlp_forward(x, params))
    assert out_bf16.shape == (16, 32)
    assert bool(jnp.all(jnp.isfinite(out_bf16)))
    assert jnp.allclose(out_bf16, ref, atol=0.3, rtol=0.1), "bf16 path diverged"

    # no-LayerNorm config (gamma/beta rows are not packed / DMA'd at all)
    cfg2 = dict(model_config, batch_norm=False)
    params2 = init_base_mlp_params(jax.random.PRNGKey(1), cfg2)
    out2 = jax.block_until_ready(
        base_mlp_forward(x, params2, compute_dtype=jnp.float32))
    ref2 = base_mlp_reference(x, params2)
    assert jnp.allclose(out2, ref2, atol=1e-4, rtol=1e-4), "no-LN mismatch vs reference"

    # ragged batch (exercises the row-pad fallback + row slice)
    x3 = jax.random.normal(jax.random.PRNGKey(2), (20, 32), jnp.float32)
    out3 = jax.block_until_ready(
        base_mlp_forward(x3, params, compute_dtype=jnp.float32))
    ref3 = base_mlp_reference(x3, params)
    assert out3.shape == (20, 32)
    assert jnp.allclose(out3, ref3, atol=1e-4, rtol=1e-4), "ragged-batch mismatch"

    print("KERNEL_OK")
</pallas_src>

<mosaic_0001>
module attributes {stable_mosaic.version = 11 : i64} {
  func.func @fused_mlp_kernel(%arg0: i32, %arg1: memref<16x32xf32, #tpu.memory_space<vmem>>, %arg2: memref<32x128xf32, #tpu.memory_space<vmem>>, %arg3: memref<128x128xf32, #tpu.memory_space<vmem>>, %arg4: memref<6x128xf32, #tpu.memory_space<vmem>>, %arg5: memref<16x32xf32, #tpu.memory_space<vmem>>) attributes {dimension_semantics = [#tpu.dimension_semantics<parallel>], iteration_bounds = array<i64: 1>, scalar_prefetch = 0 : i64, scratch_operands = 0 : i64, tpu.core_type = #tpu.core_type<tc>, window_params = [{transform_indices = @transform_0, window_bounds = array<i64: 16, 32>}, {pipeline_mode = #tpu.pipeline_mode<synchronous>, transform_indices = @transform_1, window_bounds = array<i64: 32, 128>}, {pipeline_mode = #tpu.pipeline_mode<synchronous>, transform_indices = @transform_2, window_bounds = array<i64: 128, 128>}, {pipeline_mode = #tpu.pipeline_mode<synchronous>, transform_indices = @transform_3, window_bounds = array<i64: 6, 128>}, {transform_indices = @transform_4, window_bounds = array<i64: 16, 32>}]} {
    %c0 = arith.constant 0 : index
    %c0_0 = arith.constant 0 : index
    %0 = vector.load %arg1[%c0, %c0_0] : memref<16x32xf32, #tpu.memory_space<vmem>>, vector<16x32xf32>
    %1 = tpu.iota {dimensions = array<i32: 1>} : vector<16x128xi32>
    %c32_i32 = arith.constant 32 : i32
    %2 = vector.broadcast %c32_i32 : i32 to vector<16x128xi32>
    %3 = arith.cmpi slt, %1, %2 : vector<16x128xi32>
    %c0_1 = arith.constant 0 : index
    %c0_2 = arith.constant 0 : index
    %4 = vector.load %arg2[%c0_1, %c0_2] : memref<32x128xf32, #tpu.memory_space<vmem>>, vector<32x128xf32>
    %cst = arith.constant dense<0.000000e+00> : vector<16x128xf32>
    %5 = tpu.matmul %0, %4, %cst {dimension_numbers = #tpu.dot_dimension_numbers<[1], [0], [0], [1], [0, 0, 1, 1], [], []>} : vector<16x32xf32>, vector<32x128xf32>, vector<16x128xf32> -> vector<16x128xf32>
    %c0_3 = arith.constant 0 : index
    %c0_4 = arith.constant 0 : index
    %6 = vector.load %arg4[%c0_3, %c0_4] : memref<6x128xf32, #tpu.memory_space<vmem>>, vector<1x128xf32>
    %7 = vector.broadcast %6 : vector<1x128xf32> to vector<16x128xf32>
    %8 = arith.addf %5, %7 : vector<16x128xf32>
    %c1 = arith.constant 1 : index
    %c0_5 = arith.constant 0 : index
    %9 = vector.load %arg4[%c1, %c0_5] : memref<6x128xf32, #tpu.memory_space<vmem>>, vector<1x128xf32>
    %c2 = arith.constant 2 : index
    %c0_6 = arith.constant 0 : index
    %10 = vector.load %arg4[%c2, %c0_6] : memref<6x128xf32, #tpu.memory_space<vmem>>, vector<1x128xf32>
    %cst_7 = arith.constant 0.000000e+00 : f32
    %11 = vector.broadcast %cst_7 : f32 to vector<16x128xf32>
    %12 = arith.select %3, %8, %11 : vector<16x128xi1>, vector<16x128xf32>
    %cst_8 = arith.constant dense<0.000000e+00> : vector<16xf32>
    %13 = vector.multi_reduction <add>, %12, %cst_8 [1] : vector<16x128xf32> to vector<16xf32>
    %14 = vector.shape_cast %13 : vector<16xf32> to vector<16x1xf32>
    %cst_9 = arith.constant 3.125000e-02 : f32
    %15 = vector.broadcast %cst_9 : f32 to vector<16x1xf32>
    %16 = arith.mulf %14, %15 : vector<16x1xf32>
    %17 = arith.mulf %12, %12 : vector<16x128xf32>
    %cst_10 = arith.constant dense<0.000000e+00> : vector<16xf32>
    %18 = vector.multi_reduction <add>, %17, %cst_10 [1] : vector<16x128xf32> to vector<16xf32>
    %19 = vector.shape_cast %18 : vector<16xf32> to vector<16x1xf32>
    %cst_11 = arith.constant 3.125000e-02 : f32
    %20 = vector.broadcast %cst_11 : f32 to vector<16x1xf32>
    %21 = arith.mulf %19, %20 : vector<16x1xf32>
    %22 = arith.mulf %16, %16 : vector<16x1xf32>
    %23 = arith.subf %21, %22 : vector<16x1xf32>
    %cst_12 = arith.constant 0.000000e+00 : f32
    %24 = vector.broadcast %cst_12 : f32 to vector<16x1xf32>
    %25 = arith.maximumf %23, %24 : vector<16x1xf32>
    %26 = vector.broadcast %16 : vector<16x1xf32> to vector<16x128xf32>
    %27 = arith.subf %8, %26 : vector<16x128xf32>
    %cst_13 = arith.constant 9.99999974E-6 : f32
    %28 = vector.broadcast %cst_13 : f32 to vector<16x1xf32>
    %29 = arith.addf %25, %28 : vector<16x1xf32>
    %30 = math.rsqrt %29 : vector<16x1xf32>
    %31 = vector.broadcast %30 : vector<16x1xf32> to vector<16x128xf32>
    %32 = arith.mulf %27, %31 : vector<16x128xf32>
    %33 = vector.broadcast %9 : vector<1x128xf32> to vector<16x128xf32>
    %34 = arith.mulf %32, %33 : vector<16x128xf32>
    %35 = vector.broadcast %10 : vector<1x128xf32> to vector<16x128xf32>
    %36 = arith.addf %34, %35 : vector<16x128xf32>
    %cst_14 = arith.constant 0.000000e+00 : f32
    %37 = vector.broadcast %cst_14 : f32 to vector<16x128xf32>
    %38 = arith.maximumf %36, %37 : vector<16x128xf32>
    %c0_15 = arith.constant 0 : index
    %c0_16 = arith.constant 0 : index
    %39 = vector.load %arg3[%c0_15, %c0_16] : memref<128x128xf32, #tpu.memory_space<vmem>>, vector<128x128xf32>
    %cst_17 = arith.constant dense<0.000000e+00> : vector<16x128xf32>
    %40 = tpu.matmul %38, %39, %cst_17 {dimension_numbers = #tpu.dot_dimension_numbers<[1], [0], [0], [1], [0, 0, 1, 1], [], []>} : vector<16x128xf32>, vector<128x128xf32>, vector<16x128xf32> -> vector<16x128xf32>
    %c3 = arith.constant 3 : index
    %c0_18 = arith.constant 0 : index
    %41 = vector.load %arg4[%c3, %c0_18] : memref<6x128xf32, #tpu.memory_space<vmem>>, vector<1x128xf32>
    %42 = vector.broadcast %41 : vector<1x128xf32> to vector<16x128xf32>
    %43 = arith.addf %40, %42 : vector<16x128xf32>
    %c4 = arith.constant 4 : index
    %c0_19 = arith.constant 0 : index
    %44 = vector.load %arg4[%c4, %c0_19] : memref<6x128xf32, #tpu.memory_space<vmem>>, vector<1x128xf32>
    %c5 = arith.constant 5 : index
    %c0_20 = arith.constant 0 : index
    %45 = vector.load %arg4[%c5, %c0_20] : memref<6x128xf32, #tpu.memory_space<vmem>>, vector<1x128xf32>
    %cst_21 = arith.constant 0.000000e+00 : f32
    %46 = vector.broadcast %cst_21 : f32 to vector<16x128xf32>
    %47 = arith.select %3, %43, %46 : vector<16x128xi1>, vector<16x128xf32>
    %cst_22 = arith.constant dense<0.000000e+00> : vector<16xf32>
    %48 = vector.multi_reduction <add>, %47, %cst_22 [1] : vector<16x128xf32> to vector<16xf32>
    %49 = vector.shape_cast %48 : vector<16xf32> to vector<16x1xf32>
    %cst_23 = arith.constant 3.125000e-02 : f32
    %50 = vector.broadcast %cst_23 : f32 to vector<16x1xf32>
    %51 = arith.mulf %49, %50 : vector<16x1xf32>
    %52 = arith.mulf %47, %47 : vector<16x128xf32>
    %cst_24 = arith.constant dense<0.000000e+00> : vector<16xf32>
    %53 = vector.multi_reduction <add>, %52, %cst_24 [1] : vector<16x128xf32> to vector<16xf32>
    %54 = vector.shape_cast %53 : vector<16xf32> to vector<16x1xf32>
    %cst_25 = arith.constant 3.125000e-02 : f32
    %55 = vector.broadcast %cst_25 : f32 to vector<16x1xf32>
    %56 = arith.mulf %54, %55 : vector<16x1xf32>
    %57 = arith.mulf %51, %51 : vector<16x1xf32>
    %58 = arith.subf %56, %57 : vector<16x1xf32>
    %cst_26 = arith.constant 0.000000e+00 : f32
    %59 = vector.broadcast %cst_26 : f32 to vector<16x1xf32>
    %60 = arith.maximumf %58, %59 : vector<16x1xf32>
    %61 = vector.broadcast %51 : vector<16x1xf32> to vector<16x128xf32>
    %62 = arith.subf %43, %61 : vector<16x128xf32>
    %cst_27 = arith.constant 9.99999974E-6 : f32
    %63 = vector.broadcast %cst_27 : f32 to vector<16x1xf32>
    %64 = arith.addf %60, %63 : vector<16x1xf32>
    %65 = math.rsqrt %64 : vector<16x1xf32>
    %66 = vector.broadcast %65 : vector<16x1xf32> to vector<16x128xf32>
    %67 = arith.mulf %62, %66 : vector<16x128xf32>
    %68 = vector.broadcast %44 : vector<1x128xf32> to vector<16x128xf32>
    %69 = arith.mulf %67, %68 : vector<16x128xf32>
    %70 = vector.broadcast %45 : vector<1x128xf32> to vector<16x128xf32>
    %71 = arith.addf %69, %70 : vector<16x128xf32>
    %cst_28 = arith.constant 0.000000e+00 : f32
    %72 = vector.broadcast %cst_28 : f32 to vector<16x128xf32>
    %73 = arith.maximumf %71, %72 : vector<16x128xf32>
    %74 = vector.extract_strided_slice %73 {offsets = [0, 0], sizes = [16, 32], strides = [1, 1]} : vector<16x128xf32> to vector<16x32xf32>
    %c0_29 = arith.constant 0 : index
    %c0_30 = arith.constant 0 : index
    %75 = vector.load %arg5[%c0_29, %c0_30] : memref<16x32xf32, #tpu.memory_space<vmem>>, vector<16x32xf32>
    tpu.vector_store %arg5[%c0_29, %c0_30], %74 {strides = array<i32>} : memref<16x32xf32, #tpu.memory_space<vmem>>, vector<16x32xf32>,
    return
  }
  func.func @transform_0(%arg0: i32) -> (i32, i32) {
    %c0_i32 = arith.constant 0 : i32
    %c0_i32_0 = arith.constant 0 : i32
    return %arg0, %c0_i32 : i32, i32
  }
  func.func @transform_1(%arg0: i32) -> (i32, i32) {
    %c0_i32 = arith.constant 0 : i32
    %c0_i32_0 = arith.constant 0 : i32
    %c0_i32_1 = arith.constant 0 : i32
    return %c0_i32, %c0_i32_0 : i32, i32
  }
  func.func @transform_2(%arg0: i32) -> (i32, i32) {
    %c0_i32 = arith.constant 0 : i32
    %c0_i32_0 = arith.constant 0 : i32
    %c0_i32_1 = arith.constant 0 : i32
    return %c0_i32, %c0_i32_0 : i32, i32
  }
  func.func @transform_3(%arg0: i32) -> (i32, i32) {
    %c0_i32 = arith.constant 0 : i32
    %c0_i32_0 = arith.constant 0 : i32
    %c0_i32_1 = arith.constant 0 : i32
    return %c0_i32, %c0_i32_0 : i32, i32
  }
  func.func @transform_4(%arg0: i32) -> (i32, i32) {
    %c0_i32 = arith.constant 0 : i32
    %c0_i32_0 = arith.constant 0 : i32
    return %arg0, %c0_i32 : i32, i32
  }
}

module attributes {stable_mosaic.version = 11 : i64} {
  func.func @fused_mlp_kernel(%arg0: i32, %arg1: memref<16x32xf32, #tpu.memory_space<vmem>>, %arg2: memref<32x128xf32, #tpu.memory_space<vmem>>, %arg3: memref<128x128xf32, #tpu.memory_space<vmem>>, %arg4: memref<6x128xf32, #tpu.memory_space<vmem>>, %arg5: memref<16x32xf32, #tpu.memory_space<vmem>>) attributes {dimension_semantics = [#tpu.dimension_semantics<parallel>], iteration_bounds = array<i64: 1>, scalar_prefetch = 0 : i64, scratch_operands = 0 : i64, tpu.core_type = #tpu.core_type<tc>, window_params = [{transform_indices = @transform_0, window_bounds = array<i64: 16, 32>}, {pipeline_mode = #tpu.pipeline_mode<synchronous>, transform_indices = @transform_1, window_bounds = array<i64: 32, 128>}, {pipeline_mode = #tpu.pipeline_mode<synchronous>, transform_indices = @transform_2, window_bounds = array<i64: 128, 128>}, {pipeline_mode = #tpu.pipeline_mode<synchronous>, transform_indices = @transform_3, window_bounds = array<i64: 6, 128>}, {transform_indices = @transform_4, window_bounds = array<i64: 16, 32>}]} {
    %c0 = arith.constant 0 : index
    %c0_0 = arith.constant 0 : index
    %0 = vector.load %arg1[%c0, %c0_0] : memref<16x32xf32, #tpu.memory_space<vmem>>, vector<16x32xf32>
    %1 = tpu.iota {dimensions = array<i32: 1>} : vector<16x128xi32>
    %c32_i32 = arith.constant 32 : i32
    %2 = vector.broadcast %c32_i32 : i32 to vector<16x128xi32>
    %3 = arith.cmpi slt, %1, %2 : vector<16x128xi32>
    %c0_1 = arith.constant 0 : index
    %c0_2 = arith.constant 0 : index
    %4 = vector.load %arg2[%c0_1, %c0_2] : memref<32x128xf32, #tpu.memory_space<vmem>>, vector<32x128xf32>
    %cst = arith.constant dense<0.000000e+00> : vector<16x128xf32>
    %5 = tpu.matmul %0, %4, %cst {dimension_numbers = #tpu.dot_dimension_numbers<[1], [0], [0], [1], [0, 0, 1, 1], [], []>} : vector<16x32xf32>, vector<32x128xf32>, vector<16x128xf32> -> vector<16x128xf32>
    %c0_3 = arith.constant 0 : index
    %c0_4 = arith.constant 0 : index
    %6 = vector.load %arg4[%c0_3, %c0_4] : memref<6x128xf32, #tpu.memory_space<vmem>>, vector<1x128xf32>
    %7 = vector.broadcast %6 : vector<1x128xf32> to vector<16x128xf32>
    %8 = arith.addf %5, %7 : vector<16x128xf32>
    %c1 = arith.constant 1 : index
    %c0_5 = arith.constant 0 : index
    %9 = vector.load %arg4[%c1, %c0_5] : memref<6x128xf32, #tpu.memory_space<vmem>>, vector<1x128xf32>
    %c2 = arith.constant 2 : index
    %c0_6 = arith.constant 0 : index
    %10 = vector.load %arg4[%c2, %c0_6] : memref<6x128xf32, #tpu.memory_space<vmem>>, vector<1x128xf32>
    %cst_7 = arith.constant 0.000000e+00 : f32
    %11 = vector.broadcast %cst_7 : f32 to vector<16x128xf32>
    %12 = arith.select %3, %8, %11 : vector<16x128xi1>, vector<16x128xf32>
    %cst_8 = arith.constant dense<0.000000e+00> : vector<16xf32>
    %13 = vector.multi_reduction <add>, %12, %cst_8 [1] : vector<16x128xf32> to vector<16xf32>
    %14 = vector.shape_cast %13 : vector<16xf32> to vector<16x1xf32>
    %cst_9 = arith.constant 3.125000e-02 : f32
    %15 = vector.broadcast %cst_9 : f32 to vector<16x1xf32>
    %16 = arith.mulf %14, %15 : vector<16x1xf32>
    %17 = arith.mulf %12, %12 : vector<16x128xf32>
    %cst_10 = arith.constant dense<0.000000e+00> : vector<16xf32>
    %18 = vector.multi_reduction <add>, %17, %cst_10 [1] : vector<16x128xf32> to vector<16xf32>
    %19 = vector.shape_cast %18 : vector<16xf32> to vector<16x1xf32>
    %cst_11 = arith.constant 3.125000e-02 : f32
    %20 = vector.broadcast %cst_11 : f32 to vector<16x1xf32>
    %21 = arith.mulf %19, %20 : vector<16x1xf32>
    %22 = arith.mulf %16, %16 : vector<16x1xf32>
    %23 = arith.subf %21, %22 : vector<16x1xf32>
    %cst_12 = arith.constant 0.000000e+00 : f32
    %24 = vector.broadcast %cst_12 : f32 to vector<16x1xf32>
    %25 = arith.maximumf %23, %24 : vector<16x1xf32>
    %26 = vector.broadcast %16 : vector<16x1xf32> to vector<16x128xf32>
    %27 = arith.subf %8, %26 : vector<16x128xf32>
    %cst_13 = arith.constant 9.99999974E-6 : f32
    %28 = vector.broadcast %cst_13 : f32 to vector<16x1xf32>
    %29 = arith.addf %25, %28 : vector<16x1xf32>
    %30 = math.rsqrt %29 : vector<16x1xf32>
    %31 = vector.broadcast %30 : vector<16x1xf32> to vector<16x128xf32>
    %32 = arith.mulf %27, %31 : vector<16x128xf32>
    %33 = vector.broadcast %9 : vector<1x128xf32> to vector<16x128xf32>
    %34 = arith.mulf %32, %33 : vector<16x128xf32>
    %35 = vector.broadcast %10 : vector<1x128xf32> to vector<16x128xf32>
    %36 = arith.addf %34, %35 : vector<16x128xf32>
    %cst_14 = arith.constant 0.000000e+00 : f32
    %37 = vector.broadcast %cst_14 : f32 to vector<16x128xf32>
    %38 = arith.maximumf %36, %37 : vector<16x128xf32>
    %c0_15 = arith.constant 0 : index
    %c0_16 = arith.constant 0 : index
    %39 = vector.load %arg3[%c0_15, %c0_16] : memref<128x128xf32, #tpu.memory_space<vmem>>, vector<128x128xf32>
    %cst_17 = arith.constant dense<0.000000e+00> : vector<16x128xf32>
    %40 = tpu.matmul %38, %39, %cst_17 {dimension_numbers = #tpu.dot_dimension_numbers<[1], [0], [0], [1], [0, 0, 1, 1], [], []>} : vector<16x128xf32>, vector<128x128xf32>, vector<16x128xf32> -> vector<16x128xf32>
    %c3 = arith.constant 3 : index
    %c0_18 = arith.constant 0 : index
    %41 = vector.load %arg4[%c3, %c0_18] : memref<6x128xf32, #tpu.memory_space<vmem>>, vector<1x128xf32>
    %42 = vector.broadcast %41 : vector<1x128xf32> to vector<16x128xf32>
    %43 = arith.addf %40, %42 : vector<16x128xf32>
    %c4 = arith.constant 4 : index
    %c0_19 = arith.constant 0 : index
    %44 = vector.load %arg4[%c4, %c0_19] : memref<6x128xf32, #tpu.memory_space<vmem>>, vector<1x128xf32>
    %c5 = arith.constant 5 : index
    %c0_20 = arith.constant 0 : index
    %45 = vector.load %arg4[%c5, %c0_20] : memref<6x128xf32, #tpu.memory_space<vmem>>, vector<1x128xf32>
    %cst_21 = arith.constant 0.000000e+00 : f32
    %46 = vector.broadcast %cst_21 : f32 to vector<16x128xf32>
    %47 = arith.select %3, %43, %46 : vector<16x128xi1>, vector<16x128xf32>
    %cst_22 = arith.constant dense<0.000000e+00> : vector<16xf32>
    %48 = vector.multi_reduction <add>, %47, %cst_22 [1] : vector<16x128xf32> to vector<16xf32>
    %49 = vector.shape_cast %48 : vector<16xf32> to vector<16x1xf32>
    %cst_23 = arith.constant 3.125000e-02 : f32
    %50 = vector.broadcast %cst_23 : f32 to vector<16x1xf32>
    %51 = arith.mulf %49, %50 : vector<16x1xf32>
    %52 = arith.mulf %47, %47 : vector<16x128xf32>
    %cst_24 = arith.constant dense<0.000000e+00> : vector<16xf32>
    %53 = vector.multi_reduction <add>, %52, %cst_24 [1] : vector<16x128xf32> to vector<16xf32>
    %54 = vector.shape_cast %53 : vector<16xf32> to vector<16x1xf32>
    %cst_25 = arith.constant 3.125000e-02 : f32
    %55 = vector.broadcast %cst_25 : f32 to vector<16x1xf32>
    %56 = arith.mulf %54, %55 : vector<16x1xf32>
    %57 = arith.mulf %51, %51 : vector<16x1xf32>
    %58 = arith.subf %56, %57 : vector<16x1xf32>
    %cst_26 = arith.constant 0.000000e+00 : f32
    %59 = vector.broadcast %cst_26 : f32 to vector<16x1xf32>
    %60 = arith.maximumf %58, %59 : vector<16x1xf32>
    %61 = vector.broadcast %51 : vector<16x1xf32> to vector<16x128xf32>
    %62 = arith.subf %43, %61 : vector<16x128xf32>
    %cst_27 = arith.constant 9.99999974E-6 : f32
    %63 = vector.broadcast %cst_27 : f32 to vector<16x1xf32>
    %64 = arith.addf %60, %63 : vector<16x1xf32>
    %65 = math.rsqrt %64 : vector<16x1xf32>
    %66 = vector.broadcast %65 : vector<16x1xf32> to vector<16x128xf32>
    %67 = arith.mulf %62, %66 : vector<16x128xf32>
    %68 = vector.broadcast %44 : vector<1x128xf32> to vector<16x128xf32>
    %69 = arith.mulf %67, %68 : vector<16x128xf32>
    %70 = vector.broadcast %45 : vector<1x128xf32> to vector<16x128xf32>
    %71 = arith.addf %69, %70 : vector<16x128xf32>
    %cst_28 = arith.constant 0.000000e+00 : f32
    %72 = vector.broadcast %cst_28 : f32 to vector<16x128xf32>
    %73 = arith.maximumf %71, %72 : vector<16x128xf32>
    %74 = vector.extract_strided_slice %73 {offsets = [0, 0], sizes = [16, 32], strides = [1, 1]} : vector<16x128xf32> to vector<16x32xf32>
    %c0_29 = arith.constant 0 : index
    %c0_30 = arith.constant 0 : index
    %75 = vector.load %arg5[%c0_29, %c0_30] : memref<16x32xf32, #tpu.memory_space<vmem>>, vector<16x32xf32>
    tpu.vector_store %arg5[%c0_29, %c0_30], %74 {strides = array<i32>} : memref<16x32xf32, #tpu.memory_space<vmem>>, vector<16x32xf32>,
    return
  }
  func.func @transform_0(%arg0: i32) -> (i32, i32) {
    %c0_i32 = arith.constant 0 : i32
    %c0_i32_0 = arith.constant 0 : i32
    return %arg0, %c0_i32 : i32, i32
  }
  func.func @transform_1(%arg0: i32) -> (i32, i32) {
    %c0_i32 = arith.constant 0 : i32
    %c0_i32_0 = arith.constant 0 : i32
    %c0_i32_1 = arith.constant 0 : i32
    return %c0_i32, %c0_i32_0 : i32, i32
  }
  func.func @transform_2(%arg0: i32) -> (i32, i32) {
    %c0_i32 = arith.constant 0 : i32
    %c0_i32_0 = arith.constant 0 : i32
    %c0_i32_1 = arith.constant 0 : i32
    return %c0_i32, %c0_i32_0 : i32, i32
  }
  func.func @transform_3(%arg0: i32) -> (i32, i32) {
    %c0_i32 = arith.constant 0 : i32
    %c0_i32_0 = arith.constant 0 : i32
    %c0_i32_1 = arith.constant 0 : i32
    return %c0_i32, %c0_i32_0 : i32, i32
  }
  func.func @transform_4(%arg0: i32) -> (i32, i32) {
    %c0_i32 = arith.constant 0 : i32
    %c0_i32_0 = arith.constant 0 : i32
    return %arg0, %c0_i32 : i32, i32
  }
}

</mosaic_0001>

<bundles_post_ra>
// kernel: tpu_custom_call.1
= control target key start
LH: loop header
LB: loop body
LE: loop exit
PB: predicated region body
PF: predicated region fallthrough
CT: control target
= control target key end

     0   :  { %9 = vsyncpa [#allocation3], 0  ;;  %s728_s0 = inlined_call_operand.hbm [shape: f32[16,32], index: 0, kind: input, shape index: {}]   ;;  %s729_s1 = inlined_call_operand.hbm [shape: f32[32,128], index: 1, kind: input, shape index: {}]   ;;  %s730_s2 = inlined_call_operand.hbm [shape: f32[128,128], index: 2, kind: input, shape index: {}]   ;;  %s731_s3 = inlined_call_operand.vmem [shape: f32[6,128], index: 3, kind: input, shape index: {}]   ;;  %s732_s4 = inlined_call_operand.hbm [shape: f32[16,32], index: 4, kind: output, shape index: {}]  }
   0x1   :  { %10 = vsyncpa [#allocation6], 0 }
   0x2   :  { %11 = vsyncpa [#allocation4], 0  ;;  %s589_s15 = smov [#allocation5]   ;;  %s590_s17 = smov [#allocation2]  }
   0x3   :  { %s29_s16 = sshll.u32 %s589_s15, 4  ;;  %s17_s18 = sshll.u32 %s590_s17, 4  ;;  %s30_s16 = int_to_ptr.vmem [resolvable:$true] %s29_s16  ;;  %s620_s18 = int_to_ptr.vmem [resolvable:$true] %s17_s18 }
   0x4   :  { %s495_s21 = scalar_lea.hbm %s729_s1, 512 }
   0x5   :  { %p496_p0 = scmp.ne.s32.totalorder %s729_s1, %s495_s21  ;;  %p499_p1 = scmp.lt.u32.totalorder %s495_s21, %s729_s1 }
   0x7   :  { %p501_p2 = pnand %p499_p1, %p496_p0 }
   0x9   :  { %504 = shalt.err (!%p501_p2)
}
   0xa   :  { %s505_s26 = scalar_lea.vmem %s30_s16, 512  ;;  %p510_p4 = scmp.lt.s32.totalorder %s30_s16, %s30_s16 }
   0xb   :  { %p506_p3 = scmp.ne.s32.totalorder %s30_s16, %s505_s26  ;;  %p511_p5 = scmp.lt.s32.totalorder %s505_s26, %s505_s26 }
   0xd   :  { %p512_p6 = por %p511_p5, %p510_p4 }
   0xf   :  { %p513_p7 = pnand %p512_p6, %p506_p3 }
  0x11   :  { %516 = shalt.err (!%p513_p7)
}
  0x12   :  { %s591_s27 = smov 128   ;;  %s592_s28 = smov 8  }
  0x13   :  { %35 = dma.hbm_to_vmem [thread:$0]  %s729_s1, 512, %s30_s16, [#allocation6], %s591_s27, %s591_s27, %s592_s28  }
  0x14   :  { %s517_s7 = scalar_lea.hbm %s728_s0, 256 }
  0x15   :  { %p518_p8 = scmp.ne.s32.totalorder %s728_s0, %s517_s7  ;;  %p521_p9 = scmp.lt.u32.totalorder %s517_s7, %s728_s0 }
  0x17   :  { %p523_p10 = pnand %p521_p9, %p518_p8 }
  0x19   :  { %526 = shalt.err (!%p523_p10)
}
  0x1a   :  { %s527_s12 = scalar_lea.vmem %s620_s18, 256  ;;  %p532_p12 = scmp.lt.s32.totalorder %s620_s18, %s620_s18 }
  0x1b   :  { %p528_p11 = scmp.ne.s32.totalorder %s620_s18, %s527_s12  ;;  %p533_p13 = scmp.lt.s32.totalorder %s527_s12, %s527_s12 }
  0x1d   :  { %p534_p0 = por %p533_p13, %p532_p12 }
  0x1f   :  { %p535_p1 = pnand %p534_p0, %p528_p11 }
  0x21   :  { %538 = shalt.err (!%p535_p1)
}
  0x22   :  { %23 = dma.hbm_to_vmem [thread:$0]  %s728_s0, 256, %s620_s18, [#allocation3], %s591_s27, %s591_s27, %s592_s28  }
  0x23   :  { %s593_s14 = smov [#allocation7]   ;;  %s539_s19 = scalar_lea.hbm %s730_s2, 2048 }
  0x24   :  { %s41_s15 = sshll.u32 %s593_s14, 4  ;;  %p540_p2 = scmp.ne.s32.totalorder %s730_s2, %s539_s19  ;;  %s42_s15 = int_to_ptr.vmem [resolvable:$true] %s41_s15 }
  0x25   :  { %p543_p3 = scmp.lt.u32.totalorder %s539_s19, %s730_s2 }
  0x27   :  { %p545_p4 = pnand %p543_p3, %p540_p2 }
  0x29   :  { %548 = shalt.err (!%p545_p4)
}
  0x2a   :  { %s549_s24 = scalar_lea.vmem %s42_s15, 2048  ;;  %p554_p6 = scmp.lt.s32.totalorder %s42_s15, %s42_s15 }
  0x2b   :  { %p550_p5 = scmp.ne.s32.totalorder %s42_s15, %s549_s24  ;;  %p555_p7 = scmp.lt.s32.totalorder %s549_s24, %s549_s24 }
  0x2d   :  { %p556_p8 = por %p555_p7, %p554_p6 }
  0x2f   :  { %p557_p9 = pnand %p556_p8, %p550_p5 }
  0x31   :  { %560 = shalt.err (!%p557_p9)
}
  0x32   :  { %47 = dma.hbm_to_vmem [thread:$0]  %s730_s2, 2048, %s42_s15, [#allocation6], %s591_s27, %s591_s27, %s592_s28  }
  0x33   :  { %583 = dma.done.wait [#allocation3], 256  }
  0x34   :  { %584 = vsyncadd [#allocation3], 4294967040 }
  0x35   :  { %585 = dma.done.wait [#allocation6], 2560  }
  0x36   :  { %586 = vsyncadd [#allocation6], 4294964736  ;;  %vm73_vm0 = vcmask 261120   ;;  %v64_v0 = vld [vmem:[#allocation5] sm:$0xff]  ;;  %v65_v1 = vld [vmem:[#allocation5 + $0x8] sm:$0xff]  ;;  %v61_v8 = vlaneseq  ;;  %s594_s12 = smov [#allocation8]  }
  0x37   :  { %v66_v2 = vld [vmem:[#allocation5 + $0x10] sm:$0xff]  ;;  %v441_v3 = vpack.c.bf16 %v65_v1, %v64_v0  ;;  %v67_v4 = vld [vmem:[#allocation5 + $0x18] sm:$0xff]  ;;  %v201_v19 = vld [vmem:[#allocation7] sm:$0xff]  ;;  %s350_s1 = sshll.u32 %s594_s12, 4  ;;  %s351_s1 = int_to_ptr.vmem [resolvable:$true] %s350_s1 }
  0x38   :  { %v59_v5 = vld [vmem:[#allocation2] sm:$0xff]  ;;  %v445_v6 = vpack.c.bf16 %v67_v4, %v66_v2  ;;  %v60_v7 = vld [vmem:[#allocation2 + $0x8] sm:$0xff]  ;;  %v674_v9 = vand.u32 127, %v61_v8  ;;  %v202_v20 = vld [vmem:[#allocation7 + $0x8] sm:$0xff]  ;;  %s561_s13 = scalar_lea.vmem %s351_s1, 256  ;;  %p566_p11 = scmp.lt.s32.totalorder %s351_s1, %s351_s1 }
  0x39   :  { %403 = vmatprep.mubr.msk.f32.mxu0 %vm73_vm0, %v59_v5  ;;  %442 = vmatprep.subr.bf16.mxu0 %v441_v3  ;;  %v363_v10 = vld [vmem:[%s731_s3] ss:$0 sm:$0xff]  ;;  %v449_v21 = vpack.c.bf16 %v202_v20, %v201_v19  ;;  %v204_v23 = vld [vmem:[#allocation7 + $0x18] sm:$0xff]  ;;  %v205_v25 = vld [vmem:[#allocation7 + $0x20] sm:$0xff]  ;;  %p562_p10 = scmp.ne.s32.totalorder %s351_s1, %s561_s13  ;;  %p567_p12 = scmp.lt.s32.totalorder %s561_s13, %s561_s13 }
  0x3a   :  { %444 = vmatpush3.bf16.msra.mxu0 %v441_v3  ;;  %vm63_vm1 = vcmp.lt.s32.totalorder %v674_v9, 32  ;;  %v203_v22 = vld [vmem:[#allocation7 + $0x10] sm:$0xff]  ;;  %v206_v26 = vld [vmem:[#allocation7 + $0x28] sm:$0xff]  ;;  %v208_v29 = vld [vmem:[#allocation7 + $0x38] sm:$0xff] }
  0x3b   :  { %446 = vmatprep.subr.bf16.mxu0 %v445_v6  ;;  %450 = vmatprep.subr.bf16.mxu1 %v449_v21  ;;  %v453_v24 = vpack.c.bf16 %v204_v23, %v203_v22  ;;  %v457_v27 = vpack.c.bf16 %v206_v26, %v205_v25  ;;  %v207_v28 = vld [vmem:[#allocation7 + $0x30] sm:$0xff]  ;;  %v209_v31 = vld [vmem:[#allocation7 + $0x40] sm:$0xff]  ;;  %v210_v32 = vld [vmem:[#allocation7 + $0x48] sm:$0xff]  ;;  %p568_p13 = por %p567_p12, %p566_p11 }
  0x3c   :  { %452 = vmatpush3.bf16.msra.mxu1 %v449_v21  ;;  %v461_v30 = vpack.c.bf16 %v208_v29, %v207_v28  ;;  %v211_v33 = vld [vmem:[#allocation7 + $0x50] sm:$0xff]  ;;  %v465_v34 = vpack.c.bf16 %v210_v32, %v209_v31  ;;  %v212_v35 = vld [vmem:[#allocation7 + $0x58] sm:$0xff]  ;;  %v213_v37 = vld [vmem:[#allocation7 + $0x60] sm:$0xff] }
  0x3d   :  { %454 = vmatprep.subr.bf16.mxu1 %v453_v24  ;;  %v469_v36 = vpack.c.bf16 %v212_v35, %v211_v33  ;;  %v214_v38 = vld [vmem:[#allocation7 + $0x68] sm:$0xff]  ;;  %v215_v40 = vld [vmem:[#allocation7 + $0x70] sm:$0xff]  ;;  %v216_v41 = vld [vmem:[#allocation7 + $0x78] sm:$0xff]  ;;  %p569_p0 = pnand %p568_p13, %p562_p10 }
  0x3e   :  { %448 = vmatpush3.bf16.msra.mxu0 %v445_v6  ;;  %v473_v39 = vpack.c.bf16 %v214_v38, %v213_v37  ;;  %v477_v42 = vpack.c.bf16 %v216_v41, %v215_v40  ;;  %v366_v61 = vld [vmem:[%s731_s3 + $0x1] ss:$0 sm:$0xff]  ;;  %v367_v63 = vld [vmem:[%s731_s3 + $0x2] ss:$0 sm:$0xff]  ;;  %v369_v37 = vld [vmem:[%s731_s3 + $0x4] ss:$0 sm:$0xff] }
  0x3f   :  { %v370_v40 = vld [vmem:[%s731_s3 + $0x5] ss:$0 sm:$0xff] }
  0x40   :  { %456 = vmatpush3.bf16.msra.mxu1 %v453_v24 }
  0x41   :  { %404 = vmatmul.mubr.msk.f32.vlgmr.msra.gmra.mrb[0].mxu0 %vm73_vm0, %v60_v7  ;;  %458 = vmatprep.subr.bf16.mxu1 %v457_v27 }
  0x44   :  { %460 = vmatpush3.bf16.msra.mxu1 %v457_v27 }
  0x45   :  { %462 = vmatprep.subr.bf16.mxu1 %v461_v30 }
  0x48   :  { %464 = vmatpush3.bf16.msra.mxu1 %v461_v30 }
  0x49   :  { %466 = vmatprep.subr.bf16.mxu1 %v465_v34 }
  0x4c   :  { %468 = vmatpush3.bf16.msra.mxu1 %v465_v34 }
  0x4d   :  { %470 = vmatprep.subr.bf16.mxu1 %v469_v36 }
  0x50   :  { %472 = vmatpush3.bf16.msra.mxu1 %v469_v36 }
  0x51   :  { %474 = vmatprep.subr.bf16.mxu1 %v473_v39 }
  0x54   :  { %476 = vmatpush3.bf16.msra.mxu1 %v473_v39 }
  0x55   :  { %478 = vmatprep.subr.bf16.mxu1 %v477_v42 }
  0x58   :  { %480 = vmatpush3.bf16.msra.mxu1 %v477_v42 }
 0x114   :  { %v405_v11 = vpop.f32.mrb[0].mxu0 }
 0x115   :  { %v146_v12 = vpop.f32.mrb[1].mxu0  ;;  %v680_v13 = vadd.f32 %v405_v11, %v363_v10 }
 0x116   :  { %v682_v14 = vadd.f32 %v363_v10, %v146_v12  ;;  %v368_v10 = vld [vmem:[%s731_s3 + $0x3] ss:$0 sm:$0xff] }
 0x117   :  { %v158_v17 = vsel %vm63_vm1, %v680_v13, 0.0 }
 0x118   :  { %v157_v15 = vsel %vm63_vm1, %v682_v14, 0.0  ;;  %v166_v18 = vmul.f32 %v158_v17, %v158_v17 }
 0x119   :  { %159 = vadd.xlane.f32.xlu0 %v157_v15  ;;  %v165_v16 = vmul.f32 %v157_v15, %v157_v15 }
 0x11b   :  { %167 = vadd.xlane.f32.xlu1 %v165_v16 }
 0x11d   :  { %161 = vadd.xlane.f32.xlu0 %v158_v17 }
 0x11f   :  { %169 = vadd.xlane.f32.xlu1 %v166_v18 }
 0x1a6   :  { %v160_v43 = vpop.xlane.xlu0 %159 }
 0x1a7   :  { %v163_v44 = vmul.f32 0.03125, %v160_v43 }
 0x1a8   :  { %v168_v45 = vpop.xlane.xlu1 %167 }
 0x1a9   :  { %v173_v46 = vmul.f32 %v163_v44, %v163_v44  ;;  %v171_v47 = vmul.f32 0.03125, %v168_v45  ;;  %v179_v59 = vsub.f32 %v682_v14, %v163_v44 }
 0x1aa   :  { %v162_v48 = vpop.xlane.xlu0 %161 }
 0x1ab   :  { %v175_v49 = vsub.f32 %v171_v47, %v173_v46  ;;  %v164_v50 = vmul.f32 0.03125, %v162_v48 }
 0x1ac   :  { %v170_v51 = vpop.xlane.xlu1 %169 }
 0x1ad   :  { %v177_v52 = vmax.f32 %v175_v49, 0.0  ;;  %v174_v53 = vmul.f32 %v164_v50, %v164_v50  ;;  %v172_v54 = vmul.f32 0.03125, %v170_v51  ;;  %v180_v0 = vsub.f32 %v680_v13, %v164_v50 }
 0x1af   :  { %v181_v55 = vadd.f32 1e-05, %v177_v52  ;;  %v176_v56 = vsub.f32 %v172_v54, %v174_v53 }
 0x1b1   :  { %487 = vrsqrt.f32 %v181_v55  ;;  %v178_v57 = vmax.f32 %v176_v56, 0.0 }
 0x1b3   :  { %v182_v58 = vadd.f32 1e-05, %v178_v57 }
 0x1b5   :  { %489 = vrsqrt.f32 %v182_v58 }
 0x1bb   :  { %v488_v60 = vpop.eup %487 }
 0x1bc   :  { %v185_v62 = vmul.f32 %v488_v60, %v179_v59 }
 0x1be   :  { %v191_v1 = vmul.f32 %v366_v61, %v185_v62 }
 0x1bf   :  { %v490_v2 = vpop.eup %489 }
 0x1c0   :  { %v186_v3 = vmul.f32 %v490_v2, %v180_v0  ;;  %v197_v4 = vadd.f32 %v367_v63, %v191_v1 }
 0x1c2   :  { %v192_v5 = vmul.f32 %v366_v61, %v186_v3  ;;  %v199_v6 = vmax.f32 %v197_v4, 0.0 }
 0x1c4   :  { %v198_v7 = vadd.f32 %v367_v63, %v192_v5  ;;  %438 = vmatprep.mubr.f32.mxu1 %v199_v6 }
 0x1c6   :  { %v200_v8 = vmax.f32 %v198_v7, 0.0 }
 0x1c8   :  { %439 = vmatmul.mubr.f32.vlgmr.msra.gmra.mrb[0].mxu1 %v200_v8 }
 0x29b   :  { %v440_v11 = vpop.f32.mrb[0].mxu1 }
 0x29c   :  { %v294_v12 = vadd.f32 %v440_v11, %v368_v10  ;;  %v288_v14 = vpop.f32.mrb[1].mxu1 }
 0x29d   :  { %v289_v15 = vadd.f32 %v368_v10, %v288_v14 }
 0x29e   :  { %v300_v13 = vsel %vm63_vm1, %v294_v12, 0.0 }
 0x29f   :  { %303 = vadd.xlane.f32.xlu1 %v300_v13  ;;  %v299_v16 = vsel %vm63_vm1, %v289_v15, 0.0  ;;  %v308_v17 = vmul.f32 %v300_v13, %v300_v13 }
 0x2a0   :  { %301 = vadd.xlane.f32.xlu0 %v299_v16  ;;  %v307_v18 = vmul.f32 %v299_v16, %v299_v16 }
 0x2a3   :  { %311 = vadd.xlane.f32.xlu1 %v308_v17 }
 0x2a4   :  { %309 = vadd.xlane.f32.xlu0 %v307_v18 }
 0x32c   :  { %v304_v19 = vpop.xlane.xlu1 %303 }
 0x32d   :  { %v306_v20 = vmul.f32 0.03125, %v304_v19  ;;  %v302_v21 = vpop.xlane.xlu0 %301 }
 0x32e   :  { %v305_v22 = vmul.f32 0.03125, %v302_v21 }
 0x32f   :  { %v316_v24 = vmul.f32 %v306_v20, %v306_v20  ;;  %v322_v34 = vsub.f32 %v294_v12, %v306_v20 }
 0x330   :  { %v312_v23 = vpop.xlane.xlu1 %311  ;;  %v315_v27 = vmul.f32 %v305_v22, %v305_v22  ;;  %v321_v36 = vsub.f32 %v289_v15, %v305_v22 }
 0x331   :  { %v314_v25 = vmul.f32 0.03125, %v312_v23  ;;  %v310_v26 = vpop.xlane.xlu0 %309 }
 0x332   :  { %v313_v28 = vmul.f32 0.03125, %v310_v26 }
 0x333   :  { %v318_v29 = vsub.f32 %v314_v25, %v316_v24 }
 0x334   :  { %v317_v30 = vsub.f32 %v313_v28, %v315_v27 }
 0x335   :  { %v320_v31 = vmax.f32 %v318_v29, 0.0 }
 0x336   :  { %v319_v9 = vmax.f32 %v317_v30, 0.0 }
 0x337   :  { %v324_v32 = vadd.f32 1e-05, %v320_v31 }
 0x338   :  { %v323_v33 = vadd.f32 1e-05, %v319_v9 }
 0x339   :  { %491 = vrsqrt.f32 %v324_v32 }
 0x33a   :  { %493 = vrsqrt.f32 %v323_v33 }
 0x343   :  { %v492_v35 = vpop.eup %491 }
 0x344   :  { %v494_v38 = vpop.eup %493  ;;  %v328_v39 = vmul.f32 %v492_v35, %v322_v34 }
 0x345   :  { %v327_v41 = vmul.f32 %v494_v38, %v321_v36 }
 0x346   :  { %v334_v42 = vmul.f32 %v369_v37, %v328_v39 }
 0x347   :  { %v333_v43 = vmul.f32 %v369_v37, %v327_v41 }
 0x348   :  { %v340_v44 = vadd.f32 %v370_v40, %v334_v42 }
 0x349   :  { %v339_v45 = vadd.f32 %v370_v40, %v333_v43 }
 0x34a   :  { %v342_v46 = vmax.f32 %v340_v44, 0.0 }
 0x34b   :  { %v341_v47 = vmax.f32 %v339_v45, 0.0 }
 0x34c   :  { %344 = vst.msk [vmem:[#allocation8 + $0x8] sm:$0xff] %vm73_vm0, %v342_v46 }
 0x34d   :  { %343 = vst.msk [vmem:[#allocation8] sm:$0xff] %vm73_vm0, %v341_v47 }
 0x34e   :  { %572 = shalt.err (!%p569_p0)
}
 0x34f   :  { %s573_s15 = scalar_lea.hbm %s732_s4, 256 }
 0x350   :  { %p574_p1 = scmp.ne.s32.totalorder %s732_s4, %s573_s15  ;;  %p577_p2 = scmp.lt.u32.totalorder %s573_s15, %s732_s4 }
 0x352   :  { %p579_p3 = pnand %p577_p2, %p574_p1 }
 0x354   :  { %582 = shalt.err (!%p579_p3)
}
 0x355   :  { %356 = dma.vmem_to_hbm [thread:$0]  %s351_s1, 256, %s732_s4, [#allocation4], %s591_s27, %s591_s27, %s592_s28  }
 0x356   :  { %587 = dma.done.wait [#allocation4], 256  }
 0x357   :  { %588 = vsyncadd [#allocation4], 4294967040 }
 0x358   :  { %360 = vsyncpa [#allocation3], 1 }
 0x359   :  { %361 = vsyncpa [#allocation6], 1 }
 0x35a   :  { %362 = vsyncpa [#allocation4], 1 }

// kernel: tpu_custom_call.1
= control target key start
LH: loop header
LB: loop body
LE: loop exit
PB: predicated region body
PF: predicated region fallthrough
CT: control target
= control target key end

     0   :  { %9 = vsyncpa [#allocation3], 0  ;;  %s728_s0 = inlined_call_operand.hbm [shape: f32[16,32], index: 0, kind: input, shape index: {}]   ;;  %s729_s1 = inlined_call_operand.hbm [shape: f32[32,128], index: 1, kind: input, shape index: {}]   ;;  %s730_s2 = inlined_call_operand.hbm [shape: f32[128,128], index: 2, kind: input, shape index: {}]   ;;  %s731_s3 = inlined_call_operand.vmem [shape: f32[6,128], index: 3, kind: input, shape index: {}]   ;;  %s732_s4 = inlined_call_operand.hbm [shape: f32[16,32], index: 4, kind: output, shape index: {}]  }
   0x1   :  { %10 = vsyncpa [#allocation6], 0 }
   0x2   :  { %11 = vsyncpa [#allocation4], 0  ;;  %s589_s15 = smov [#allocation5]   ;;  %s590_s17 = smov [#allocation2]  }
   0x3   :  { %s29_s16 = sshll.u32 %s589_s15, 4  ;;  %s17_s18 = sshll.u32 %s590_s17, 4  ;;  %s30_s16 = int_to_ptr.vmem [resolvable:$true] %s29_s16  ;;  %s620_s18 = int_to_ptr.vmem [resolvable:$true] %s17_s18 }
   0x4   :  { %s495_s21 = scalar_lea.hbm %s729_s1, 512 }
   0x5   :  { %p496_p0 = scmp.ne.s32.totalorder %s729_s1, %s495_s21  ;;  %p499_p1 = scmp.lt.u32.totalorder %s495_s21, %s729_s1 }
   0x7   :  { %p501_p2 = pnand %p499_p1, %p496_p0 }
   0x9   :  { %504 = shalt.err (!%p501_p2)
}
   0xa   :  { %s505_s26 = scalar_lea.vmem %s30_s16, 512  ;;  %p510_p4 = scmp.lt.s32.totalorder %s30_s16, %s30_s16 }
   0xb   :  { %p506_p3 = scmp.ne.s32.totalorder %s30_s16, %s505_s26  ;;  %p511_p5 = scmp.lt.s32.totalorder %s505_s26, %s505_s26 }
   0xd   :  { %p512_p6 = por %p511_p5, %p510_p4 }
   0xf   :  { %p513_p7 = pnand %p512_p6, %p506_p3 }
  0x11   :  { %516 = shalt.err (!%p513_p7)
}
  0x12   :  { %s591_s27 = smov 128   ;;  %s592_s28 = smov 8  }
  0x13   :  { %35 = dma.hbm_to_vmem [thread:$0]  %s729_s1, 512, %s30_s16, [#allocation6], %s591_s27, %s591_s27, %s592_s28  }
  0x14   :  { %s517_s7 = scalar_lea.hbm %s728_s0, 256 }
  0x15   :  { %p518_p8 = scmp.ne.s32.totalorder %s728_s0, %s517_s7  ;;  %p521_p9 = scmp.lt.u32.totalorder %s517_s7, %s728_s0 }
  0x17   :  { %p523_p10 = pnand %p521_p9, %p518_p8 }
  0x19   :  { %526 = shalt.err (!%p523_p10)
}
  0x1a   :  { %s527_s12 = scalar_lea.vmem %s620_s18, 256  ;;  %p532_p12 = scmp.lt.s32.totalorder %s620_s18, %s620_s18 }
  0x1b   :  { %p528_p11 = scmp.ne.s32.totalorder %s620_s18, %s527_s12  ;;  %p533_p13 = scmp.lt.s32.totalorder %s527_s12, %s527_s12 }
  0x1d   :  { %p534_p0 = por %p533_p13, %p532_p12 }
  0x1f   :  { %p535_p1 = pnand %p534_p0, %p528_p11 }
  0x21   :  { %538 = shalt.err (!%p535_p1)
}
  0x22   :  { %23 = dma.hbm_to_vmem [thread:$0]  %s728_s0, 256, %s620_s18, [#allocation3], %s591_s27, %s591_s27, %s592_s28  }
  0x23   :  { %s593_s14 = smov [#allocation7]   ;;  %s539_s19 = scalar_lea.hbm %s730_s2, 2048 }
  0x24   :  { %s41_s15 = sshll.u32 %s593_s14, 4  ;;  %p540_p2 = scmp.ne.s32.totalorder %s730_s2, %s539_s19  ;;  %s42_s15 = int_to_ptr.vmem [resolvable:$true] %s41_s15 }
  0x25   :  { %p543_p3 = scmp.lt.u32.totalorder %s539_s19, %s730_s2 }
  0x27   :  { %p545_p4 = pnand %p543_p3, %p540_p2 }
  0x29   :  { %548 = shalt.err (!%p545_p4)
}
  0x2a   :  { %s549_s24 = scalar_lea.vmem %s42_s15, 2048  ;;  %p554_p6 = scmp.lt.s32.totalorder %s42_s15, %s42_s15 }
  0x2b   :  { %p550_p5 = scmp.ne.s32.totalorder %s42_s15, %s549_s24  ;;  %p555_p7 = scmp.lt.s32.totalorder %s549_s24, %s549_s24 }
  0x2d   :  { %p556_p8 = por %p555_p7, %p554_p6 }
  0x2f   :  { %p557_p9 = pnand %p556_p8, %p550_p5 }
  0x31   :  { %560 = shalt.err (!%p557_p9)
}
  0x32   :  { %47 = dma.hbm_to_vmem [thread:$0]  %s730_s2, 2048, %s42_s15, [#allocation6], %s591_s27, %s591_s27, %s592_s28  }
  0x33   :  { %583 = dma.done.wait [#allocation3], 256  }
  0x34   :  { %584 = vsyncadd [#allocation3], 4294967040 }
  0x35   :  { %585 = dma.done.wait [#allocation6], 2560  }
  0x36   :  { %586 = vsyncadd [#allocation6], 4294964736  ;;  %vm73_vm0 = vcmask 261120   ;;  %v64_v0 = vld [vmem:[#allocation5] sm:$0xff]  ;;  %v65_v1 = vld [vmem:[#allocation5 + $0x8] sm:$0xff]  ;;  %v61_v8 = vlaneseq  ;;  %s594_s12 = smov [#allocation8]  }
  0x37   :  { %v66_v2 = vld [vmem:[#allocation5 + $0x10] sm:$0xff]  ;;  %v441_v3 = vpack.c.bf16 %v65_v1, %v64_v0  ;;  %v67_v4 = vld [vmem:[#allocation5 + $0x18] sm:$0xff]  ;;  %v201_v19 = vld [vmem:[#allocation7] sm:$0xff]  ;;  %s350_s1 = sshll.u32 %s594_s12, 4  ;;  %s351_s1 = int_to_ptr.vmem [resolvable:$true] %s350_s1 }
  0x38   :  { %v59_v5 = vld [vmem:[#allocation2] sm:$0xff]  ;;  %v445_v6 = vpack.c.bf16 %v67_v4, %v66_v2  ;;  %v60_v7 = vld [vmem:[#allocation2 + $0x8] sm:$0xff]  ;;  %v674_v9 = vand.u32 127, %v61_v8  ;;  %v202_v20 = vld [vmem:[#allocation7 + $0x8] sm:$0xff]  ;;  %s561_s13 = scalar_lea.vmem %s351_s1, 256  ;;  %p566_p11 = scmp.lt.s32.totalorder %s351_s1, %s351_s1 }
  0x39   :  { %403 = vmatprep.mubr.msk.f32.mxu0 %vm73_vm0, %v59_v5  ;;  %442 = vmatprep.subr.bf16.mxu0 %v441_v3  ;;  %v363_v10 = vld [vmem:[%s731_s3] ss:$0 sm:$0xff]  ;;  %v449_v21 = vpack.c.bf16 %v202_v20, %v201_v19  ;;  %v204_v23 = vld [vmem:[#allocation7 + $0x18] sm:$0xff]  ;;  %v205_v25 = vld [vmem:[#allocation7 + $0x20] sm:$0xff]  ;;  %p562_p10 = scmp.ne.s32.totalorder %s351_s1, %s561_s13  ;;  %p567_p12 = scmp.lt.s32.totalorder %s561_s13, %s561_s13 }
  0x3a   :  { %444 = vmatpush3.bf16.msra.mxu0 %v441_v3  ;;  %vm63_vm1 = vcmp.lt.s32.totalorder %v674_v9, 32  ;;  %v203_v22 = vld [vmem:[#allocation7 + $0x10] sm:$0xff]  ;;  %v206_v26 = vld [vmem:[#allocation7 + $0x28] sm:$0xff]  ;;  %v208_v29 = vld [vmem:[#allocation7 + $0x38] sm:$0xff] }
  0x3b   :  { %446 = vmatprep.subr.bf16.mxu0 %v445_v6  ;;  %450 = vmatprep.subr.bf16.mxu1 %v449_v21  ;;  %v453_v24 = vpack.c.bf16 %v204_v23, %v203_v22  ;;  %v457_v27 = vpack.c.bf16 %v206_v26, %v205_v25  ;;  %v207_v28 = vld [vmem:[#allocation7 + $0x30] sm:$0xff]  ;;  %v209_v31 = vld [vmem:[#allocation7 + $0x40] sm:$0xff]  ;;  %v210_v32 = vld [vmem:[#allocation7 + $0x48] sm:$0xff]  ;;  %p568_p13 = por %p567_p12, %p566_p11 }
  0x3c   :  { %452 = vmatpush3.bf16.msra.mxu1 %v449_v21  ;;  %v461_v30 = vpack.c.bf16 %v208_v29, %v207_v28  ;;  %v211_v33 = vld [vmem:[#allocation7 + $0x50] sm:$0xff]  ;;  %v465_v34 = vpack.c.bf16 %v210_v32, %v209_v31  ;;  %v212_v35 = vld [vmem:[#allocation7 + $0x58] sm:$0xff]  ;;  %v213_v37 = vld [vmem:[#allocation7 + $0x60] sm:$0xff] }
  0x3d   :  { %454 = vmatprep.subr.bf16.mxu1 %v453_v24  ;;  %v469_v36 = vpack.c.bf16 %v212_v35, %v211_v33  ;;  %v214_v38 = vld [vmem:[#allocation7 + $0x68] sm:$0xff]  ;;  %v215_v40 = vld [vmem:[#allocation7 + $0x70] sm:$0xff]  ;;  %v216_v41 = vld [vmem:[#allocation7 + $0x78] sm:$0xff]  ;;  %p569_p0 = pnand %p568_p13, %p562_p10 }
  0x3e   :  { %448 = vmatpush3.bf16.msra.mxu0 %v445_v6  ;;  %v473_v39 = vpack.c.bf16 %v214_v38, %v213_v37  ;;  %v477_v42 = vpack.c.bf16 %v216_v41, %v215_v40  ;;  %v366_v61 = vld [vmem:[%s731_s3 + $0x1] ss:$0 sm:$0xff]  ;;  %v367_v63 = vld [vmem:[%s731_s3 + $0x2] ss:$0 sm:$0xff]  ;;  %v369_v37 = vld [vmem:[%s731_s3 + $0x4] ss:$0 sm:$0xff] }
  0x3f   :  { %v370_v40 = vld [vmem:[%s731_s3 + $0x5] ss:$0 sm:$0xff] }
  0x40   :  { %456 = vmatpush3.bf16.msra.mxu1 %v453_v24 }
  0x41   :  { %404 = vmatmul.mubr.msk.f32.vlgmr.msra.gmra.mrb[0].mxu0 %vm73_vm0, %v60_v7  ;;  %458 = vmatprep.subr.bf16.mxu1 %v457_v27 }
  0x44   :  { %460 = vmatpush3.bf16.msra.mxu1 %v457_v27 }
  0x45   :  { %462 = vmatprep.subr.bf16.mxu1 %v461_v30 }
  0x48   :  { %464 = vmatpush3.bf16.msra.mxu1 %v461_v30 }
  0x49   :  { %466 = vmatprep.subr.bf16.mxu1 %v465_v34 }
  0x4c   :  { %468 = vmatpush3.bf16.msra.mxu1 %v465_v34 }
  0x4d   :  { %470 = vmatprep.subr.bf16.mxu1 %v469_v36 }
  0x50   :  { %472 = vmatpush3.bf16.msra.mxu1 %v469_v36 }
  0x51   :  { %474 = vmatprep.subr.bf16.mxu1 %v473_v39 }
  0x54   :  { %476 = vmatpush3.bf16.msra.mxu1 %v473_v39 }
  0x55   :  { %478 = vmatprep.subr.bf16.mxu1 %v477_v42 }
  0x58   :  { %480 = vmatpush3.bf16.msra.mxu1 %v477_v42 }
 0x114   :  { %v405_v11 = vpop.f32.mrb[0].mxu0 }
 0x115   :  { %v146_v12 = vpop.f32.mrb[1].mxu0  ;;  %v680_v13 = vadd.f32 %v405_v11, %v363_v10 }
 0x116   :  { %v682_v14 = vadd.f32 %v363_v10, %v146_v12  ;;  %v368_v10 = vld [vmem:[%s731_s3 + $0x3] ss:$0 sm:$0xff] }
 0x117   :  { %v158_v17 = vsel %vm63_vm1, %v680_v13, 0.0 }
 0x118   :  { %v157_v15 = vsel %vm63_vm1, %v682_v14, 0.0  ;;  %v166_v18 = vmul.f32 %v158_v17, %v158_v17 }
 0x119   :  { %159 = vadd.xlane.f32.xlu0 %v157_v15  ;;  %v165_v16 = vmul.f32 %v157_v15, %v157_v15 }
 0x11b   :  { %167 = vadd.xlane.f32.xlu1 %v165_v16 }
 0x11d   :  { %161 = vadd.xlane.f32.xlu0 %v158_v17 }
 0x11f   :  { %169 = vadd.xlane.f32.xlu1 %v166_v18 }
 0x1a6   :  { %v160_v43 = vpop.xlane.xlu0 %159 }
 0x1a7   :  { %v163_v44 = vmul.f32 0.03125, %v160_v43 }
 0x1a8   :  { %v168_v45 = vpop.xlane.xlu1 %167 }
 0x1a9   :  { %v173_v46 = vmul.f32 %v163_v44, %v163_v44  ;;  %v171_v47 = vmul.f32 0.03125, %v168_v45  ;;  %v179_v59 = vsub.f32 %v682_v14, %v163_v44 }
 0x1aa   :  { %v162_v48 = vpop.xlane.xlu0 %161 }
 0x1ab   :  { %v175_v49 = vsub.f32 %v171_v47, %v173_v46  ;;  %v164_v50 = vmul.f32 0.03125, %v162_v48 }
 0x1ac   :  { %v170_v51 = vpop.xlane.xlu1 %169 }
 0x1ad   :  { %v177_v52 = vmax.f32 %v175_v49, 0.0  ;;  %v174_v53 = vmul.f32 %v164_v50, %v164_v50  ;;  %v172_v54 = vmul.f32 0.03125, %v170_v51  ;;  %v180_v0 = vsub.f32 %v680_v13, %v164_v50 }
 0x1af   :  { %v181_v55 = vadd.f32 1e-05, %v177_v52  ;;  %v176_v56 = vsub.f32 %v172_v54, %v174_v53 }
 0x1b1   :  { %487 = vrsqrt.f32 %v181_v55  ;;  %v178_v57 = vmax.f32 %v176_v56, 0.0 }
 0x1b3   :  { %v182_v58 = vadd.f32 1e-05, %v178_v57 }
 0x1b5   :  { %489 = vrsqrt.f32 %v182_v58 }
 0x1bb   :  { %v488_v60 = vpop.eup %487 }
 0x1bc   :  { %v185_v62 = vmul.f32 %v488_v60, %v179_v59 }
 0x1be   :  { %v191_v1 = vmul.f32 %v366_v61, %v185_v62 }
 0x1bf   :  { %v490_v2 = vpop.eup %489 }
 0x1c0   :  { %v186_v3 = vmul.f32 %v490_v2, %v180_v0  ;;  %v197_v4 = vadd.f32 %v367_v63, %v191_v1 }
 0x1c2   :  { %v192_v5 = vmul.f32 %v366_v61, %v186_v3  ;;  %v199_v6 = vmax.f32 %v197_v4, 0.0 }
 0x1c4   :  { %v198_v7 = vadd.f32 %v367_v63, %v192_v5  ;;  %438 = vmatprep.mubr.f32.mxu1 %v199_v6 }
 0x1c6   :  { %v200_v8 = vmax.f32 %v198_v7, 0.0 }
 0x1c8   :  { %439 = vmatmul.mubr.f32.vlgmr.msra.gmra.mrb[0].mxu1 %v200_v8 }
 0x29b   :  { %v440_v11 = vpop.f32.mrb[0].mxu1 }
 0x29c   :  { %v294_v12 = vadd.f32 %v440_v11, %v368_v10  ;;  %v288_v14 = vpop.f32.mrb[1].mxu1 }
 0x29d   :  { %v289_v15 = vadd.f32 %v368_v10, %v288_v14 }
 0x29e   :  { %v300_v13 = vsel %vm63_vm1, %v294_v12, 0.0 }
 0x29f   :  { %303 = vadd.xlane.f32.xlu1 %v300_v13  ;;  %v299_v16 = vsel %vm63_vm1, %v289_v15, 0.0  ;;  %v308_v17 = vmul.f32 %v300_v13, %v300_v13 }
 0x2a0   :  { %301 = vadd.xlane.f32.xlu0 %v299_v16  ;;  %v307_v18 = vmul.f32 %v299_v16, %v299_v16 }
 0x2a3   :  { %311 = vadd.xlane.f32.xlu1 %v308_v17 }
 0x2a4   :  { %309 = vadd.xlane.f32.xlu0 %v307_v18 }
 0x32c   :  { %v304_v19 = vpop.xlane.xlu1 %303 }
 0x32d   :  { %v306_v20 = vmul.f32 0.03125, %v304_v19  ;;  %v302_v21 = vpop.xlane.xlu0 %301 }
 0x32e   :  { %v305_v22 = vmul.f32 0.03125, %v302_v21 }
 0x32f   :  { %v316_v24 = vmul.f32 %v306_v20, %v306_v20  ;;  %v322_v34 = vsub.f32 %v294_v12, %v306_v20 }
 0x330   :  { %v312_v23 = vpop.xlane.xlu1 %311  ;;  %v315_v27 = vmul.f32 %v305_v22, %v305_v22  ;;  %v321_v36 = vsub.f32 %v289_v15, %v305_v22 }
 0x331   :  { %v314_v25 = vmul.f32 0.03125, %v312_v23  ;;  %v310_v26 = vpop.xlane.xlu0 %309 }
 0x332   :  { %v313_v28 = vmul.f32 0.03125, %v310_v26 }
 0x333   :  { %v318_v29 = vsub.f32 %v314_v25, %v316_v24 }
 0x334   :  { %v317_v30 = vsub.f32 %v313_v28, %v315_v27 }
 0x335   :  { %v320_v31 = vmax.f32 %v318_v29, 0.0 }
 0x336   :  { %v319_v9 = vmax.f32 %v317_v30, 0.0 }
 0x337   :  { %v324_v32 = vadd.f32 1e-05, %v320_v31 }
 0x338   :  { %v323_v33 = vadd.f32 1e-05, %v319_v9 }
 0x339   :  { %491 = vrsqrt.f32 %v324_v32 }
 0x33a   :  { %493 = vrsqrt.f32 %v323_v33 }
 0x343   :  { %v492_v35 = vpop.eup %491 }
 0x344   :  { %v494_v38 = vpop.eup %493  ;;  %v328_v39 = vmul.f32 %v492_v35, %v322_v34 }
 0x345   :  { %v327_v41 = vmul.f32 %v494_v38, %v321_v36 }
 0x346   :  { %v334_v42 = vmul.f32 %v369_v37, %v328_v39 }
 0x347   :  { %v333_v43 = vmul.f32 %v369_v37, %v327_v41 }
 0x348   :  { %v340_v44 = vadd.f32 %v370_v40, %v334_v42 }
 0x349   :  { %v339_v45 = vadd.f32 %v370_v40, %v333_v43 }
 0x34a   :  { %v342_v46 = vmax.f32 %v340_v44, 0.0 }
 0x34b   :  { %v341_v47 = vmax.f32 %v339_v45, 0.0 }
 0x34c   :  { %344 = vst.msk [vmem:[#allocation8 + $0x8] sm:$0xff] %vm73_vm0, %v342_v46 }
 0x34d   :  { %343 = vst.msk [vmem:[#allocation8] sm:$0xff] %vm73_vm0, %v341_v47 }
 0x34e   :  { %572 = shalt.err (!%p569_p0)
}
 0x34f   :  { %s573_s15 = scalar_lea.hbm %s732_s4, 256 }
 0x350   :  { %p574_p1 = scmp.ne.s32.totalorder %s732_s4, %s573_s15  ;;  %p577_p2 = scmp.lt.u32.totalorder %s573_s15, %s732_s4 }
 0x352   :  { %p579_p3 = pnand %p577_p2, %p574_p1 }
 0x354   :  { %582 = shalt.err (!%p579_p3)
}
 0x355   :  { %356 = dma.vmem_to_hbm [thread:$0]  %s351_s1, 256, %s732_s4, [#allocation4], %s591_s27, %s591_s27, %s592_s28  }
 0x356   :  { %587 = dma.done.wait [#allocation4], 256  }
 0x357   :  { %588 = vsyncadd [#allocation4], 4294967040 }
 0x358   :  { %360 = vsyncpa [#allocation3], 1 }
 0x359   :  { %361 = vsyncpa [#allocation6], 1 }
 0x35a   :  { %362 = vsyncpa [#allocation4], 1 }

</bundles_post_ra>
